<compile_context>
chip_gen: v7x
topology: tpu7x:2x2x1
jax: 0.10.0
libtpu: 0.0.40
codegen_flags: <defaults>
</compile_context>

<pallas_src>
import math

import jax
import jax.numpy as jnp
from jax.experimental import pallas as pl
from jax.experimental.pallas import tpu as pltpu

_GCONST_ = -0.9189385332046727

# ---- small config consistent with the module's forward ----
B = 2            # batch
C = 16           # pool_dim (feature channels of the hooked encoder layer)
H = 16           # spatial H of that layer
W = 16           # spatial W
P_COND = 8       # condition_vec (positional encoding dim), must be % 4 == 0
K_BLOCKS = 2     # coupling_blocks
CLAMP = 1.9      # clamp_alpha (affine_clamping)
N_FIB = 256      # N: rows per FIB chunk (multiple of 128 -> lane-dense blocks)

S1 = C // 2                  # split_len1
S2 = C - S1                  # split_len2
D_IN = S1 + P_COND           # subnet input dim (x1 ++ cond)
HID = 2 * D_IN               # subnet hidden dim (subnet_fc: Linear(d, 2d))
D_OUT = 2 * S2               # subnet output dim (scale+shift for x2)


# --------------------------------------------------------------------------
# Pallas kernel: conditional-flow decoder + log-prob + loss for one FIB chunk
# of N_FIB rows, in feature-minor (C, N) layout.
# --------------------------------------------------------------------------
def _cflow_decoder_kernel(e_ref, c_ref, wpf_ref, bf_ref, w1t_ref, b1_ref,
                          w2t_ref, b2_ref, plj_ref, out_ref):
    x = e_ref[...].astype(jnp.float32)        # (C, N)   feature columns per row
    cond = c_ref[...].astype(jnp.float32)     # (P, N)   positional condition
    n = x.shape[1]
    logdet = jnp.zeros((1, n), jnp.float32)

    # K coupling blocks, statically unrolled.
    for k in range(K_BLOCKS):
        # Fused (global SOFTPLUS affine + soft permutation), folded on host:
        #   X <- (Wp @ diag(scale)) @ X + Wp @ offset
        x = jnp.dot(wpf_ref[k], x, preferred_element_type=jnp.float32) + bf_ref[k]

        x1 = x[:S1, :]                        # (S1, N)
        x2 = x[S1:, :]                        # (S2, N)

        # subnet_fc on [x1; cond]: single K=D_IN contraction (sublane stack)
        xc = jnp.concatenate([x1, cond], axis=0)                  # (D_IN, N)
        h = jnp.dot(w1t_ref[k], xc, preferred_element_type=jnp.float32) + b1_ref[k]
        h = jnp.maximum(h, 0.0)                                   # (HID, N)
        a = 0.1 * (jnp.dot(w2t_ref[k], h, preferred_element_type=jnp.float32)
                   + b2_ref[k])                                   # (D_OUT, N)

        s = CLAMP * jnp.tanh(a[:S2, :])       # log-scale (clamped)
        t = a[S2:, :]                         # shift
        x2 = x2 * jnp.exp(s) + t
        logdet = logdet + jnp.sum(s, axis=0, keepdims=True)
        x = jnp.concatenate([x1, x2], axis=0)   # cheap full-tile sublane stack

    # add total permutation log-Jacobian (precomputed on host, (1,1) broadcast)
    logdet = logdet + plj_ref[...]

    # get_logp: C*_GCONST_ - 0.5*sum(z^2) + logdet_J ; log_prob = logp / C
    logp = (C * _GCONST_
            - 0.5 * jnp.sum(x * x, axis=0, keepdims=True)
            + logdet)
    log_prob = logp * (1.0 / C)               # (1, N)

    # loss = -LogSigmoid(log_prob), numerically stable
    lp = log_prob
    logsig = jnp.where(lp >= 0.0,
                       -jnp.log1p(jnp.exp(-lp)),
                       lp - jnp.log1p(jnp.exp(lp)))

    # lane-dense packed output: row 0 = log_prob, row 1 = loss
    out_ref[0:1, :] = log_prob
    out_ref[1:2, :] = -logsig


def cflow_fib_pallas(eT, cT, kp):
    """Runs all FIB chunks (grid axis) through the Pallas decoder kernel.

    eT: (C, E) features, cT: (P, E) condition (feature-minor layout).
    Returns (log_prob, loss), each (E,).
    """
    E = eT.shape[1]
    assert E % N_FIB == 0, "keep E a multiple of N_FIB for the synthetic kernel"
    G = E // N_FIB

    def const_spec(shape):
        nd = len(shape)
        return pl.BlockSpec(shape, lambda g, _nd=nd: (0,) * _nd)

    in_specs = [
        pl.BlockSpec((C, N_FIB), lambda g: (0, g)),
        pl.BlockSpec((P_COND, N_FIB), lambda g: (0, g)),
        const_spec(kp["wpf"].shape),
        const_spec(kp["bf"].shape),
        const_spec(kp["w1t"].shape),
        const_spec(kp["b1c"].shape),
        const_spec(kp["w2t"].shape),
        const_spec(kp["b2c"].shape),
        const_spec(kp["plj"].shape),
    ]
    out_specs = pl.BlockSpec((2, N_FIB), lambda g: (0, g))
    out_shape = jax.ShapeDtypeStruct((2, E), jnp.float32)

    fn = pl.pallas_call(
        _cflow_decoder_kernel,
        out_shape=out_shape,
        grid_spec=pltpu.PrefetchScalarGridSpec(
            num_scalar_prefetch=0,
            grid=(G,),
            in_specs=in_specs,
            out_specs=out_specs),
        compiler_params=pltpu.CompilerParams(
            dimension_semantics=("parallel",)),
    )
    packed = fn(eT, cT, kp["wpf"], kp["bf"], kp["w1t"], kp["b1c"],
                kp["w2t"], kp["b2c"], kp["plj"])
    return packed[0], packed[1]


# --------------------------------------------------------------------------
# Glue: positional encoding (exact port of positionalencoding2d) + params
# --------------------------------------------------------------------------
def positionalencoding2d_jax(D, H_, W_):
    if D % 4 != 0:
        raise ValueError("dim must be divisible by 4, got {}".format(D))
    Pm = jnp.zeros((D, H_, W_), jnp.float32)
    Dh = D // 2
    div_term = jnp.exp(jnp.arange(0.0, Dh, 2.0, dtype=jnp.float32)
                       * (-(math.log(10000.0) / Dh)))
    pos_w = jnp.arange(0.0, W_, dtype=jnp.float32)[:, None]
    pos_h = jnp.arange(0.0, H_, dtype=jnp.float32)[:, None]
    sw = jnp.sin(pos_w * div_term).T[:, None, :]    # (Dh//2, 1, W)
    cw = jnp.cos(pos_w * div_term).T[:, None, :]
    sh = jnp.sin(pos_h * div_term).T[:, :, None]    # (Dh//2, H, 1)
    ch = jnp.cos(pos_h * div_term).T[:, :, None]
    Pm = Pm.at[0:Dh:2, :, :].set(jnp.broadcast_to(sw, (sw.shape[0], H_, W_)))
    Pm = Pm.at[1:Dh:2, :, :].set(jnp.broadcast_to(cw, (cw.shape[0], H_, W_)))
    Pm = Pm.at[Dh::2, :, :].set(jnp.broadcast_to(sh, (sh.shape[0], H_, W_)))
    Pm = Pm.at[Dh + 1::2, :, :].set(jnp.broadcast_to(ch, (ch.shape[0], H_, W_)))
    return Pm


def init_params(key):
    """Deterministic synthetic init of K AllInOneBlock(+subnet_fc) parameter sets."""
    ks = jax.random.split(key, 3 * K_BLOCKS + 1)
    # FrEIA SOFTPLUS init: global_scale = 2*log(exp(0.5*10*1.0) - 1)
    gs_init = 2.0 * math.log(math.exp(0.5 * 10.0 * 1.0) - 1.0)
    gscale = jnp.full((K_BLOCKS, 1, C), gs_init, jnp.float32)
    # small nonzero offsets so the folded bias path is exercised
    goff = 0.05 * jax.random.normal(ks[-1], (K_BLOCKS, 1, C), jnp.float32)
    wps, w1s, b1s, w2s, b2s = [], [], [], [], []
    for k in range(K_BLOCKS):
        m = jax.random.normal(ks[3 * k], (C, C), jnp.float32)
        q, _ = jnp.linalg.qr(m)                  # random orthogonal (permute_soft)
        wps.append(q)
        w1s.append(jax.random.normal(ks[3 * k + 1], (D_IN, HID), jnp.float32)
                   * (1.0 / math.sqrt(D_IN)))
        b1s.append(jnp.zeros((1, HID), jnp.float32))
        w2s.append(jax.random.normal(ks[3 * k + 2], (HID, D_OUT), jnp.float32)
                   * (1.0 / math.sqrt(HID)))
        b2s.append(jnp.zeros((1, D_OUT), jnp.float32))
    wp = jnp.stack(wps)                          # (K, C, C)
    return dict(gscale=gscale, goff=goff,
                wpT=jnp.transpose(wp, (0, 2, 1)),  # row layout does x @ Wp.T
                w1=jnp.stack(w1s), b1=jnp.stack(b1s),
                w2=jnp.stack(w2s), b2=jnp.stack(b2s))


def prepare_kernel_params(params):
    """Hoist loop-invariant math and transpose for the feature-minor kernel."""
    gs = params["gscale"]          # (K, 1, C)
    go = params["goff"]            # (K, 1, C)
    m = params["wpT"]              # (K, C, C); row layout: x_new = x @ m
    # numerically stable SOFTPLUS(beta=0.5): scale = 0.1 * 2 * softplus(0.5*gs)
    scale = 0.1 * 2.0 * jax.nn.softplus(0.5 * gs)          # (K, 1, C)
    mt = jnp.transpose(m, (0, 2, 1))                       # (K, C, C)
    # fold global affine into the permutation: X <- (mt @ diag(scale)) X + mt @ go
    wpf = mt * scale                                       # (K, C, C)
    bf = jnp.einsum('kij,kj->ki', mt, go[:, 0, :])[..., None]   # (K, C, 1)
    plj = jnp.sum(jnp.log(scale)).reshape(1, 1).astype(jnp.float32)  # total log-jac
    w1t = jnp.transpose(params["w1"], (0, 2, 1))           # (K, HID, D_IN)
    b1c = jnp.transpose(params["b1"], (0, 2, 1))           # (K, HID, 1)
    w2t = jnp.transpose(params["w2"], (0, 2, 1))           # (K, D_OUT, HID)
    b2c = jnp.transpose(params["b2"], (0, 2, 1))           # (K, D_OUT, 1)
    return dict(wpf=wpf, bf=bf, w1t=w1t, b1c=b1c, w2t=w2t, b2c=b2c, plj=plj)


def cflow_fib_reference(e_r, c_r, params):
    """Pure-JAX reference of the same math in the original row layout."""
    x = e_r
    logdet = jnp.zeros((e_r.shape[0],), jnp.float32)
    for k in range(K_BLOCKS):
        gs = params["gscale"][k]
        scale = 0.1 * 2.0 * jax.nn.softplus(0.5 * gs)
        x = x * scale + params["goff"][k]
        x = x @ params["wpT"][k]
        x1, x2 = x[:, :S1], x[:, S1:]
        h = jnp.maximum(
            jnp.concatenate([x1, c_r], axis=1) @ params["w1"][k] + params["b1"][k], 0.0)
        a = 0.1 * (h @ params["w2"][k] + params["b2"][k])
        s = CLAMP * jnp.tanh(a[:, :S2])
        t = a[:, S2:]
        x2 = x2 * jnp.exp(s) + t
        logdet = logdet + jnp.sum(s, axis=1) + jnp.sum(jnp.log(scale))
        x = jnp.concatenate([x1, x2], axis=1)
    logp = C * _GCONST_ - 0.5 * jnp.sum(x * x, axis=1) + logdet
    lp = logp / C
    return lp, -jax.nn.log_sigmoid(lp)


if __name__ == "__main__":
    key = jax.random.PRNGKey(0)
    k_feat, k_perm, k_par = jax.random.split(key, 3)

    # Stand-in for the pooled encoder activation (NCHW, as torch produces it).
    e = jax.random.normal(k_feat, (B, C, H, W), jnp.float32)

    # Decoder_forward glue: positional encoding -> (E, P), features -> (E, C)
    S = H * W
    E = B * S
    pos = positionalencoding2d_jax(P_COND, H, W)                 # (P, H, W)
    p_b = jnp.broadcast_to(pos[None], (B, P_COND, H, W))
    c_r = p_b.reshape(B, P_COND, S).transpose(0, 2, 1).reshape(E, P_COND)
    e_r = e.reshape(B, C, S).transpose(0, 2, 1).reshape(E, C)

    # random fiber permutation (torch.randperm analogue) + gather (glue)
    perm = jax.random.permutation(k_perm, E)
    e_p = e_r[perm]
    c_p = c_r[perm]

    params = init_params(k_par)
    kparams = prepare_kernel_params(params)

    # feature-minor layout for the kernel: (C, E) / (P, E)
    eT = jnp.asarray(e_p.T)
    cT = jnp.asarray(c_p.T)

    log_prob, loss = cflow_fib_pallas(eT, cT, kparams)
    jax.block_until_ready((log_prob, loss))

    lp_ref, loss_ref = cflow_fib_reference(e_p, c_p, params)
    # tolerance covers the f32 rounding shift from folding the global affine
    # into the permutation matmul on the host.
    assert jnp.allclose(log_prob, lp_ref, atol=1e-3, rtol=1e-3), "log_prob mismatch"
    assert jnp.allclose(loss, loss_ref, atol=1e-3, rtol=1e-3), "loss mismatch"
    assert log_prob.shape == (E,) and loss.shape == (E,)

    print("KERNEL_OK")
</pallas_src>

<mosaic_0001>
module attributes {stable_mosaic.version = 11 : i64} {
  func.func @_cflow_decoder_kernel(%arg0: i32, %arg1: memref<16x256xf32, #tpu.memory_space<vmem>>, %arg2: memref<8x256xf32, #tpu.memory_space<vmem>>, %arg3: memref<2x16x16xf32, #tpu.memory_space<vmem>>, %arg4: memref<2x16x1xf32, #tpu.memory_space<vmem>>, %arg5: memref<2x32x16xf32, #tpu.memory_space<vmem>>, %arg6: memref<2x32x1xf32, #tpu.memory_space<vmem>>, %arg7: memref<2x16x32xf32, #tpu.memory_space<vmem>>, %arg8: memref<2x16x1xf32, #tpu.memory_space<vmem>>, %arg9: memref<1x1xf32, #tpu.memory_space<vmem>>, %arg10: memref<2x256xf32, #tpu.memory_space<vmem>>) attributes {dimension_semantics = [#tpu.dimension_semantics<parallel>], iteration_bounds = array<i64: 2>, scalar_prefetch = 0 : i64, scratch_operands = 0 : i64, tpu.core_type = #tpu.core_type<tc>, window_params = [{transform_indices = @transform_0, window_bounds = array<i64: 16, 256>}, {transform_indices = @transform_1, window_bounds = array<i64: 8, 256>}, {pipeline_mode = #tpu.pipeline_mode<synchronous>, transform_indices = @transform_2, window_bounds = array<i64: 2, 16, 16>}, {pipeline_mode = #tpu.pipeline_mode<synchronous>, transform_indices = @transform_3, window_bounds = array<i64: 2, 16, 1>}, {pipeline_mode = #tpu.pipeline_mode<synchronous>, transform_indices = @transform_4, window_bounds = array<i64: 2, 32, 16>}, {pipeline_mode = #tpu.pipeline_mode<synchronous>, transform_indices = @transform_5, window_bounds = array<i64: 2, 32, 1>}, {pipeline_mode = #tpu.pipeline_mode<synchronous>, transform_indices = @transform_6, window_bounds = array<i64: 2, 16, 32>}, {pipeline_mode = #tpu.pipeline_mode<synchronous>, transform_indices = @transform_7, window_bounds = array<i64: 2, 16, 1>}, {pipeline_mode = #tpu.pipeline_mode<synchronous>, transform_indices = @transform_8, window_bounds = array<i64: 1, 1>}, {transform_indices = @transform_9, window_bounds = array<i64: 2, 256>}]} {
    %c0 = arith.constant 0 : index
    %c0_0 = arith.constant 0 : index
    %0 = vector.load %arg1[%c0, %c0_0] : memref<16x256xf32, #tpu.memory_space<vmem>>, vector<16x256xf32>
    %c0_1 = arith.constant 0 : index
    %c0_2 = arith.constant 0 : index
    %1 = vector.load %arg2[%c0_1, %c0_2] : memref<8x256xf32, #tpu.memory_space<vmem>>, vector<8x256xf32>
    %cst = arith.constant 0.000000e+00 : f32
    %2 = vector.broadcast %cst : f32 to vector<1x256xf32>
    %c0_3 = arith.constant 0 : index
    %c0_4 = arith.constant 0 : index
    %c0_5 = arith.constant 0 : index
    %3 = vector.load %arg3[%c0_3, %c0_4, %c0_5] : memref<2x16x16xf32, #tpu.memory_space<vmem>>, vector<1x16x16xf32>
    %4 = vector.shape_cast %3 : vector<1x16x16xf32> to vector<16x16xf32>
    %cst_6 = arith.constant dense<0.000000e+00> : vector<16x256xf32>
    %5 = tpu.matmul %4, %0, %cst_6 {dimension_numbers = #tpu.dot_dimension_numbers<[1], [0], [0], [1], [0, 0, 1, 1], [], []>} : vector<16x16xf32>, vector<16x256xf32>, vector<16x256xf32> -> vector<16x256xf32>
    %c0_7 = arith.constant 0 : index
    %c0_8 = arith.constant 0 : index
    %c0_9 = arith.constant 0 : index
    %6 = vector.load %arg4[%c0_7, %c0_8, %c0_9] : memref<2x16x1xf32, #tpu.memory_space<vmem>>, vector<1x16x1xf32>
    %7 = vector.shape_cast %6 : vector<1x16x1xf32> to vector<16x1xf32>
    %8 = vector.broadcast %7 : vector<16x1xf32> to vector<16x256xf32>
    %9 = arith.addf %5, %8 : vector<16x256xf32>
    %10 = vector.extract_strided_slice %9 {offsets = [0, 0], sizes = [8, 256], strides = [1, 1]} : vector<16x256xf32> to vector<8x256xf32>
    %11 = vector.extract_strided_slice %9 {offsets = [8, 0], sizes = [8, 256], strides = [1, 1]} : vector<16x256xf32> to vector<8x256xf32>
    %12 = tpu.concatenate %10, %1 in 0 : vector<8x256xf32>, vector<8x256xf32> -> vector<16x256xf32>
    %c0_10 = arith.constant 0 : index
    %c0_11 = arith.constant 0 : index
    %c0_12 = arith.constant 0 : index
    %13 = vector.load %arg5[%c0_10, %c0_11, %c0_12] : memref<2x32x16xf32, #tpu.memory_space<vmem>>, vector<1x32x16xf32>
    %14 = vector.shape_cast %13 : vector<1x32x16xf32> to vector<32x16xf32>
    %cst_13 = arith.constant dense<0.000000e+00> : vector<32x256xf32>
    %15 = tpu.matmul %14, %12, %cst_13 {dimension_numbers = #tpu.dot_dimension_numbers<[1], [0], [0], [1], [0, 0, 1, 1], [], []>} : vector<32x16xf32>, vector<16x256xf32>, vector<32x256xf32> -> vector<32x256xf32>
    %c0_14 = arith.constant 0 : index
    %c0_15 = arith.constant 0 : index
    %c0_16 = arith.constant 0 : index
    %16 = vector.load %arg6[%c0_14, %c0_15, %c0_16] : memref<2x32x1xf32, #tpu.memory_space<vmem>>, vector<1x32x1xf32>
    %17 = vector.shape_cast %16 : vector<1x32x1xf32> to vector<32x1xf32>
    %18 = vector.broadcast %17 : vector<32x1xf32> to vector<32x256xf32>
    %19 = arith.addf %15, %18 : vector<32x256xf32>
    %cst_17 = arith.constant 0.000000e+00 : f32
    %20 = vector.broadcast %cst_17 : f32 to vector<32x256xf32>
    %21 = arith.maximumf %19, %20 : vector<32x256xf32>
    %c0_18 = arith.constant 0 : index
    %c0_19 = arith.constant 0 : index
    %c0_20 = arith.constant 0 : index
    %22 = vector.load %arg7[%c0_18, %c0_19, %c0_20] : memref<2x16x32xf32, #tpu.memory_space<vmem>>, vector<1x16x32xf32>
    %23 = vector.shape_cast %22 : vector<1x16x32xf32> to vector<16x32xf32>
    %cst_21 = arith.constant dense<0.000000e+00> : vector<16x256xf32>
    %24 = tpu.matmul %23, %21, %cst_21 {dimension_numbers = #tpu.dot_dimension_numbers<[1], [0], [0], [1], [0, 0, 1, 1], [], []>} : vector<16x32xf32>, vector<32x256xf32>, vector<16x256xf32> -> vector<16x256xf32>
    %c0_22 = arith.constant 0 : index
    %c0_23 = arith.constant 0 : index
    %c0_24 = arith.constant 0 : index
    %25 = vector.load %arg8[%c0_22, %c0_23, %c0_24] : memref<2x16x1xf32, #tpu.memory_space<vmem>>, vector<1x16x1xf32>
    %26 = vector.shape_cast %25 : vector<1x16x1xf32> to vector<16x1xf32>
    %27 = vector.broadcast %26 : vector<16x1xf32> to vector<16x256xf32>
    %28 = arith.addf %24, %27 : vector<16x256xf32>
    %cst_25 = arith.constant 1.000000e-01 : f32
    %29 = vector.broadcast %cst_25 : f32 to vector<16x256xf32>
    %30 = arith.mulf %29, %28 : vector<16x256xf32>
    %31 = vector.extract_strided_slice %30 {offsets = [0, 0], sizes = [8, 256], strides = [1, 1]} : vector<16x256xf32> to vector<8x256xf32>
    %32 = math.tanh %31 : vector<8x256xf32>
    %cst_26 = arith.constant 1.900000e+00 : f32
    %33 = vector.broadcast %cst_26 : f32 to vector<8x256xf32>
    %34 = arith.mulf %33, %32 : vector<8x256xf32>
    %35 = vector.extract_strided_slice %30 {offsets = [8, 0], sizes = [8, 256], strides = [1, 1]} : vector<16x256xf32> to vector<8x256xf32>
    %36 = math.exp %34 : vector<8x256xf32>
    %37 = arith.mulf %11, %36 : vector<8x256xf32>
    %38 = arith.addf %37, %35 : vector<8x256xf32>
    %cst_27 = arith.constant dense<0.000000e+00> : vector<256xf32>
    %39 = vector.multi_reduction <add>, %34, %cst_27 [0] : vector<8x256xf32> to vector<256xf32>
    %40 = vector.shape_cast %39 : vector<256xf32> to vector<1x256xf32>
    %41 = arith.addf %2, %40 : vector<1x256xf32>
    %42 = tpu.concatenate %10, %38 in 0 : vector<8x256xf32>, vector<8x256xf32> -> vector<16x256xf32>
    %c1 = arith.constant 1 : index
    %c0_28 = arith.constant 0 : index
    %c0_29 = arith.constant 0 : index
    %43 = vector.load %arg3[%c1, %c0_28, %c0_29] : memref<2x16x16xf32, #tpu.memory_space<vmem>>, vector<1x16x16xf32>
    %44 = vector.shape_cast %43 : vector<1x16x16xf32> to vector<16x16xf32>
    %cst_30 = arith.constant dense<0.000000e+00> : vector<16x256xf32>
    %45 = tpu.matmul %44, %42, %cst_30 {dimension_numbers = #tpu.dot_dimension_numbers<[1], [0], [0], [1], [0, 0, 1, 1], [], []>} : vector<16x16xf32>, vector<16x256xf32>, vector<16x256xf32> -> vector<16x256xf32>
    %c1_31 = arith.constant 1 : index
    %c0_32 = arith.constant 0 : index
    %c0_33 = arith.constant 0 : index
    %46 = vector.load %arg4[%c1_31, %c0_32, %c0_33] : memref<2x16x1xf32, #tpu.memory_space<vmem>>, vector<1x16x1xf32>
    %47 = vector.shape_cast %46 : vector<1x16x1xf32> to vector<16x1xf32>
    %48 = vector.broadcast %47 : vector<16x1xf32> to vector<16x256xf32>
    %49 = arith.addf %45, %48 : vector<16x256xf32>
    %50 = vector.extract_strided_slice %49 {offsets = [0, 0], sizes = [8, 256], strides = [1, 1]} : vector<16x256xf32> to vector<8x256xf32>
    %51 = vector.extract_strided_slice %49 {offsets = [8, 0], sizes = [8, 256], strides = [1, 1]} : vector<16x256xf32> to vector<8x256xf32>
    %52 = tpu.concatenate %50, %1 in 0 : vector<8x256xf32>, vector<8x256xf32> -> vector<16x256xf32>
    %c1_34 = arith.constant 1 : index
    %c0_35 = arith.constant 0 : index
    %c0_36 = arith.constant 0 : index
    %53 = vector.load %arg5[%c1_34, %c0_35, %c0_36] : memref<2x32x16xf32, #tpu.memory_space<vmem>>, vector<1x32x16xf32>
    %54 = vector.shape_cast %53 : vector<1x32x16xf32> to vector<32x16xf32>
    %cst_37 = arith.constant dense<0.000000e+00> : vector<32x256xf32>
    %55 = tpu.matmul %54, %52, %cst_37 {dimension_numbers = #tpu.dot_dimension_numbers<[1], [0], [0], [1], [0, 0, 1, 1], [], []>} : vector<32x16xf32>, vector<16x256xf32>, vector<32x256xf32> -> vector<32x256xf32>
    %c1_38 = arith.constant 1 : index
    %c0_39 = arith.constant 0 : index
    %c0_40 = arith.constant 0 : index
    %56 = vector.load %arg6[%c1_38, %c0_39, %c0_40] : memref<2x32x1xf32, #tpu.memory_space<vmem>>, vector<1x32x1xf32>
    %57 = vector.shape_cast %56 : vector<1x32x1xf32> to vector<32x1xf32>
    %58 = vector.broadcast %57 : vector<32x1xf32> to vector<32x256xf32>
    %59 = arith.addf %55, %58 : vector<32x256xf32>
    %cst_41 = arith.constant 0.000000e+00 : f32
    %60 = vector.broadcast %cst_41 : f32 to vector<32x256xf32>
    %61 = arith.maximumf %59, %60 : vector<32x256xf32>
    %c1_42 = arith.constant 1 : index
    %c0_43 = arith.constant 0 : index
    %c0_44 = arith.constant 0 : index
    %62 = vector.load %arg7[%c1_42, %c0_43, %c0_44] : memref<2x16x32xf32, #tpu.memory_space<vmem>>, vector<1x16x32xf32>
    %63 = vector.shape_cast %62 : vector<1x16x32xf32> to vector<16x32xf32>
    %cst_45 = arith.constant dense<0.000000e+00> : vector<16x256xf32>
    %64 = tpu.matmul %63, %61, %cst_45 {dimension_numbers = #tpu.dot_dimension_numbers<[1], [0], [0], [1], [0, 0, 1, 1], [], []>} : vector<16x32xf32>, vector<32x256xf32>, vector<16x256xf32> -> vector<16x256xf32>
    %c1_46 = arith.constant 1 : index
    %c0_47 = arith.constant 0 : index
    %c0_48 = arith.constant 0 : index
    %65 = vector.load %arg8[%c1_46, %c0_47, %c0_48] : memref<2x16x1xf32, #tpu.memory_space<vmem>>, vector<1x16x1xf32>
    %66 = vector.shape_cast %65 : vector<1x16x1xf32> to vector<16x1xf32>
    %67 = vector.broadcast %66 : vector<16x1xf32> to vector<16x256xf32>
    %68 = arith.addf %64, %67 : vector<16x256xf32>
    %cst_49 = arith.constant 1.000000e-01 : f32
    %69 = vector.broadcast %cst_49 : f32 to vector<16x256xf32>
    %70 = arith.mulf %69, %68 : vector<16x256xf32>
    %71 = vector.extract_strided_slice %70 {offsets = [0, 0], sizes = [8, 256], strides = [1, 1]} : vector<16x256xf32> to vector<8x256xf32>
    %72 = math.tanh %71 : vector<8x256xf32>
    %cst_50 = arith.constant 1.900000e+00 : f32
    %73 = vector.broadcast %cst_50 : f32 to vector<8x256xf32>
    %74 = arith.mulf %73, %72 : vector<8x256xf32>
    %75 = vector.extract_strided_slice %70 {offsets = [8, 0], sizes = [8, 256], strides = [1, 1]} : vector<16x256xf32> to vector<8x256xf32>
    %76 = math.exp %74 : vector<8x256xf32>
    %77 = arith.mulf %51, %76 : vector<8x256xf32>
    %78 = arith.addf %77, %75 : vector<8x256xf32>
    %cst_51 = arith.constant dense<0.000000e+00> : vector<256xf32>
    %79 = vector.multi_reduction <add>, %74, %cst_51 [0] : vector<8x256xf32> to vector<256xf32>
    %80 = vector.shape_cast %79 : vector<256xf32> to vector<1x256xf32>
    %81 = arith.addf %41, %80 : vector<1x256xf32>
    %82 = tpu.concatenate %50, %78 in 0 : vector<8x256xf32>, vector<8x256xf32> -> vector<16x256xf32>
    %c0_52 = arith.constant 0 : index
    %c0_53 = arith.constant 0 : index
    %83 = vector.load %arg9[%c0_52, %c0_53] : memref<1x1xf32, #tpu.memory_space<vmem>>, vector<1x1xf32>
    %84 = vector.broadcast %83 : vector<1x1xf32> to vector<1x256xf32>
    %85 = arith.addf %81, %84 : vector<1x256xf32>
    %86 = arith.mulf %82, %82 : vector<16x256xf32>
    %cst_54 = arith.constant dense<0.000000e+00> : vector<256xf32>
    %87 = vector.multi_reduction <add>, %86, %cst_54 [0] : vector<16x256xf32> to vector<256xf32>
    %88 = vector.shape_cast %87 : vector<256xf32> to vector<1x256xf32>
    %cst_55 = arith.constant 5.000000e-01 : f32
    %89 = vector.broadcast %cst_55 : f32 to vector<1x256xf32>
    %90 = arith.mulf %89, %88 : vector<1x256xf32>
    %cst_56 = arith.constant -14.7030163 : f32
    %91 = vector.broadcast %cst_56 : f32 to vector<1x256xf32>
    %92 = arith.subf %91, %90 : vector<1x256xf32>
    %93 = arith.addf %92, %85 : vector<1x256xf32>
    %cst_57 = arith.constant 6.250000e-02 : f32
    %94 = vector.broadcast %cst_57 : f32 to vector<1x256xf32>
    %95 = arith.mulf %93, %94 : vector<1x256xf32>
    %cst_58 = arith.constant 0.000000e+00 : f32
    %96 = vector.broadcast %cst_58 : f32 to vector<1x256xf32>
    %97 = arith.cmpf oge, %95, %96 : vector<1x256xf32>
    %cst_59 = arith.constant 0.000000e+00 : f32
    %98 = vector.broadcast %cst_59 : f32 to vector<1x256xf32>
    %99 = arith.subf %98, %95 : vector<1x256xf32>
    %100 = math.exp %99 : vector<1x256xf32>
    %101 = math.log1p %100 : vector<1x256xf32>
    %cst_60 = arith.constant 0.000000e+00 : f32
    %102 = vector.broadcast %cst_60 : f32 to vector<1x256xf32>
    %103 = arith.subf %102, %101 : vector<1x256xf32>
    %104 = math.exp %95 : vector<1x256xf32>
    %105 = math.log1p %104 : vector<1x256xf32>
    %106 = arith.subf %95, %105 : vector<1x256xf32>
    %107 = arith.select %97, %103, %106 : vector<1x256xi1>, vector<1x256xf32>
    %c0_61 = arith.constant 0 : index
    %c0_62 = arith.constant 0 : index
    %108 = vector.load %arg10[%c0_61, %c0_62] : memref<2x256xf32, #tpu.memory_space<vmem>>, vector<1x256xf32>
    tpu.vector_store %arg10[%c0_61, %c0_62], %95 {strides = array<i32>} : memref<2x256xf32, #tpu.memory_space<vmem>>, vector<1x256xf32>,
    %cst_63 = arith.constant 0.000000e+00 : f32
    %109 = vector.broadcast %cst_63 : f32 to vector<1x256xf32>
    %110 = arith.subf %109, %107 : vector<1x256xf32>
    %c1_64 = arith.constant 1 : index
    %c0_65 = arith.constant 0 : index
    %111 = vector.load %arg10[%c1_64, %c0_65] : memref<2x256xf32, #tpu.memory_space<vmem>>, vector<1x256xf32>
    tpu.vector_store %arg10[%c1_64, %c0_65], %110 {strides = array<i32>} : memref<2x256xf32, #tpu.memory_space<vmem>>, vector<1x256xf32>,
    return
  }
  func.func @transform_0(%arg0: i32) -> (i32, i32) {
    %c0_i32 = arith.constant 0 : i32
    %c0_i32_0 = arith.constant 0 : i32
    return %c0_i32, %arg0 : i32, i32
  }
  func.func @transform_1(%arg0: i32) -> (i32, i32) {
    %c0_i32 = arith.constant 0 : i32
    %c0_i32_0 = arith.constant 0 : i32
    return %c0_i32, %arg0 : i32, i32
  }
  func.func @transform_2(%arg0: i32) -> (i32, i32, i32) {
    %c0_i32 = arith.constant 0 : i32
    %c0_i32_0 = arith.constant 0 : i32
    %c0_i32_1 = arith.constant 0 : i32
    %c0_i32_2 = arith.constant 0 : i32
    return %c0_i32, %c0_i32_0, %c0_i32_1 : i32, i32, i32
  }
  func.func @transform_3(%arg0: i32) -> (i32, i32, i32) {
    %c0_i32 = arith.constant 0 : i32
    %c0_i32_0 = arith.constant 0 : i32
    %c0_i32_1 = arith.constant 0 : i32
    %c0_i32_2 = arith.constant 0 : i32
    return %c0_i32, %c0_i32_0, %c0_i32_1 : i32, i32, i32
  }
  func.func @transform_4(%arg0: i32) -> (i32, i32, i32) {
    %c0_i32 = arith.constant 0 : i32
    %c0_i32_0 = arith.constant 0 : i32
    %c0_i32_1 = arith.constant 0 : i32
    %c0_i32_2 = arith.constant 0 : i32
    return %c0_i32, %c0_i32_0, %c0_i32_1 : i32, i32, i32
  }
  func.func @transform_5(%arg0: i32) -> (i32, i32, i32) {
    %c0_i32 = arith.constant 0 : i32
    %c0_i32_0 = arith.constant 0 : i32
    %c0_i32_1 = arith.constant 0 : i32
    %c0_i32_2 = arith.constant 0 : i32
    return %c0_i32, %c0_i32_0, %c0_i32_1 : i32, i32, i32
  }
  func.func @transform_6(%arg0: i32) -> (i32, i32, i32) {
    %c0_i32 = arith.constant 0 : i32
    %c0_i32_0 = arith.constant 0 : i32
    %c0_i32_1 = arith.constant 0 : i32
    %c0_i32_2 = arith.constant 0 : i32
    return %c0_i32, %c0_i32_0, %c0_i32_1 : i32, i32, i32
  }
  func.func @transform_7(%arg0: i32) -> (i32, i32, i32) {
    %c0_i32 = arith.constant 0 : i32
    %c0_i32_0 = arith.constant 0 : i32
    %c0_i32_1 = arith.constant 0 : i32
    %c0_i32_2 = arith.constant 0 : i32
    return %c0_i32, %c0_i32_0, %c0_i32_1 : i32, i32, i32
  }
  func.func @transform_8(%arg0: i32) -> (i32, i32) {
    %c0_i32 = arith.constant 0 : i32
    %c0_i32_0 = arith.constant 0 : i32
    %c0_i32_1 = arith.constant 0 : i32
    return %c0_i32, %c0_i32_0 : i32, i32
  }
  func.func @transform_9(%arg0: i32) -> (i32, i32) {
    %c0_i32 = arith.constant 0 : i32
    %c0_i32_0 = arith.constant 0 : i32
    return %c0_i32, %arg0 : i32, i32
  }
}

</mosaic_0001>

<bundles_post_ra>
// kernel: tpu_custom_call.1
= control target key start
LH: loop header
LB: loop body
LE: loop exit
PB: predicated region body
PF: predicated region fallthrough
CT: control target
= control target key end

     0   :  { %s1957_s0 = inlined_call_operand.vmem [shape: f32[16,512], index: 0, kind: input, shape index: {}]   ;;  %s1958_s1 = inlined_call_operand.vmem [shape: f32[8,512], index: 1, kind: input, shape index: {}]   ;;  %s1959_s2 = inlined_call_operand.vmem [shape: f32[2,16,16], index: 2, kind: input, shape index: {}]   ;;  %s1960_s3 = inlined_call_operand.vmem [shape: f32[2,16,1], index: 3, kind: input, shape index: {}]   ;;  %s1961_s4 = inlined_call_operand.vmem [shape: f32[2,32,16], index: 4, kind: input, shape index: {}]   ;;  %s1962_s5 = inlined_call_operand.vmem [shape: f32[2,32,1], index: 5, kind: input, shape index: {}]   ;;  %s1963_s6 = inlined_call_operand.vmem [shape: f32[2,16,32], index: 6, kind: input, shape index: {}]   ;;  %s1964_s7 = inlined_call_operand.vmem [shape: f32[2,16,1], index: 7, kind: input, shape index: {}]   ;;  %s1965_s8 = inlined_call_operand.<no memory space> [shape: f32[1,1], index: 8, kind: input, shape index: {}]   ;;  %s1966_s9 = inlined_call_operand.hbm [shape: f32[2,512], index: 9, kind: output, shape index: {}]  }
   0x1   :  { %v14_v0 = vstv %s1965_s8 }
   0x2   :  { %15 = vst [vmem:[#allocation2] sm:$0x1] %v14_v0 }
   0x3   :  { %16 = vsyncpa [#allocation5], 0 }
   0x4   :  { %18 = vsyncpa [#allocation5 + $0x1], 0  ;;  %s1628_s11 = smov 0   ;;  %s1630_s12 = smov 0  }
   0x5   :  { %s1632_s13 = smov 0   ;;  %s1634_s14 = smov 0  }
   0x6 LB: > { %s1649_s8 = sadd.s32 4294967295, %s1569_s14   ;;  %s1348_s15 = sadd.s32 4294967294, %s1569_s14   ;;  %s1569_s14 = sphi %s1634_s14, %s1976_s14   ;;  %s1565_s13 = sphi %s1632_s13, %s1975_s13   ;;  %s1561_s12 = sphi %s1630_s12, %s1974_s12   ;;  %s1557_s11 = sphi %s1628_s11, %s1973_s11  }
   0x7   : > { %s1653_s16 = sadd.s32 1, %s1569_s14   ;;  %s31_s17 = sadd.s32 1, %s1565_s13 }
   0x8   : > { %s28_s18 = ssub.s32 %s1569_s14, %s1653_s16  ;;  %p38_p0 = scmp.ne.s32.totalorder %s1565_s13, %s1561_s12 }
   0x9   : > { %p29_p1 = scmp.eq.s32.totalorder %s28_s18, 0  ;;  %p39_p2 = scmp.eq.s32.totalorder %s1569_s14, 0 }
   0xa   : > { %p241_p3 = scmp.eq.s32.totalorder %s1649_s8, 1  ;;  %p246_p4 = scmp.ne.s32.totalorder %s1561_s12, %s1557_s11 }
   0xb   : > { %s1665_s19 = scalar_select %p29_p1, %s1565_s13, %s31_s17  }
   0xc   : > { %p40_p5 = por %p39_p2, %p38_p0  ;;  %p1667_p6 = por %p241_p3, %p38_p0 }
   0xd   : > { %p247_p7 = scmp.eq.s32.totalorder %s1348_s15, 1  ;;  %p1350_p9 = scmp.ge.s32.totalorder %s1569_s14, 2 }
   0xf   : > { %p1671_p8 = por %p247_p7, %p246_p4  ;;  %284 = sbr.rel (%p1350_p9) target bundleno = 29 (0x1d), region = 44 }
  0x16   : > { %287 = sbr.rel (!%p40_p5) target bundleno = 29 (0x1d), region = 48  ;;  %s289_s22 = sand.u32 (%p40_p5), 1, %s1565_s13  }
  0x17   : > { %s1397_s23 = sshll.u32 (%p40_p5), %s1569_s14, 4  ;;  %s1351_s24 = sshll.u32 (%p40_p5), %s289_s22, 5 }
  0x18   : > { %s294_s27 = scalar_lea.vmem (%p40_p5), %s1957_s0, %s1397_s23  ;;  %s291_s28 = scalar_lea.vmem (%p40_p5), [#allocation3], %s1351_s24 }
  0x19   : > { %v307_v1 = vld [vmem:[%s294_s27] sm:$0xff] (%p40_p5)  ;;  %v309_v2 = vld [vmem:[%s294_s27 + $0x8] sm:$0xff] (%p40_p5) }
  0x1a   : > { %v311_v3 = vld [vmem:[%s294_s27 + $0x20] sm:$0xff] (%p40_p5)  ;;  %308 = vst [vmem:[%s291_s28] sm:$0xff] (%p40_p5), %v307_v1  ;;  %310 = vst [vmem:[%s291_s28 + $0x8] sm:$0xff] (%p40_p5), %v309_v2  ;;  %v313_v4 = vld [vmem:[%s294_s27 + $0x28] sm:$0xff] (%p40_p5) }
  0x1b   : > { %312 = vst [vmem:[%s291_s28 + $0x10] sm:$0xff] (%p40_p5), %v311_v3  ;;  %314 = vst [vmem:[%s291_s28 + $0x18] sm:$0xff] (%p40_p5), %v313_v4 }
  0x1d PF: > { %p1354_p10 = scmp.ge.s32.totalorder %s1569_s14, 1  ;;  %p328_p11 = scmp.lt.s32.totalorder %s1569_s14, 3 }
  0x1f   : > { %p329_p12 = pnand %p1354_p10, %p328_p11 }
  0x20   : > { %s1686_s29 = sand.u32 (!%p329_p12), 1, %s1561_s12   ;;  %v1571_v5 = vmov (!%p329_p12), 0.0   ;;  %v1572_v6 = vmov (!%p329_p12), 0   ;;  %v391_v7 = vld [vmem:[%s1960_s3] sm:$0xff] (!%p329_p12)  ;;  %vm403_vm0 = vcmask (!%p329_p12), 130048   ;;  %v494_v16 = vld [vmem:[%s1962_s5 + $0x18] sm:$0xff] (!%p329_p12) }
  0x21   : > { %332 = sbr.rel (%p329_p12) target bundleno = 1535 (0x5ff), region = 75  ;;  %s1355_s30 = sshll.u32 (!%p329_p12), %s1686_s29, 5  ;;  %474 = vmatprep.mubr.f32.mxu0 (!%p329_p12), %v1571_v5  ;;  %1473 = vset.pattern.permute.xlu0 (!%p329_p12), %v1572_v6  ;;  %v491_v8 = vld [vmem:[%s1962_s5] sm:$0xff] (!%p329_p12)  ;;  %v390_v17 = vld [vmem:[%s1959_s2 + $0x8] sm:$0xff] (!%p329_p12)  ;;  %v1369_v19 = vld [vmem:[%s1960_s3 + $0x10] sm:$0xff] (!%p329_p12)  ;;  %vm638_vm1 = vcmask (!%p329_p12), 261120  }
  0x22   : > { %395 = vperm.xlu0 (!%p329_p12), %1473, %v391_v7   ;;  %591 = vmatprep.mubr.f32.mxu1 (!%p329_p12), %v1571_v5  ;;  %s337_s22 = scalar_lea.vmem (!%p329_p12), [#allocation3], %s1355_s30  ;;  %v389_v15 = vld [vmem:[%s1959_s2] sm:$0xff] (!%p329_p12)  ;;  %v392_v18 = vld [vmem:[%s1960_s3 + $0x8] sm:$0xff] (!%p329_p12)  ;;  %v1380_v21 = vld [vmem:[%s1962_s5 + $0x38] sm:$0xff] (!%p329_p12)  ;;  %s1357_s15 = sshll.u32 (!%p329_p12), %s1649_s8, 1 }
  0x23   : > { %v384_v9 = vld [vmem:[%s337_s22 + $0x8] sm:$0xff] (!%p329_p12)  ;;  %v386_v10 = vld [vmem:[%s337_s22 + $0x18] sm:$0xff] (!%p329_p12)  ;;  %v383_v11 = vld [vmem:[%s337_s22] sm:$0xff] (!%p329_p12)  ;;  %1474 = vset.pattern.permute.xlu1 (!%p329_p12), %v1572_v6  ;;  %p377_p13 = scmp.lt.s32.totalorder (!%p329_p12), %s1357_s15, 3  ;;  %s1356_s28 = sshll.u32 (!%p329_p12), %s1686_s29, 2 }
  0x24   : > { %v1399_v12 = vpack.c.bf16 (!%p329_p12), %v386_v10, %v384_v9  ;;  %v385_v13 = vld [vmem:[%s337_s22 + $0x10] sm:$0xff] (!%p329_p12)  ;;  %v1378_v20 = vld [vmem:[%s1962_s5 + $0x28] sm:$0xff] (!%p329_p12)  ;;  %v1119_v23 = vld [vmem:[#allocation2] sm:$0x1] (!%p329_p12)  ;;  %s1888_s30 = scalar_lea.vmem (!%p329_p12), [#allocation4], %s1356_s28  ;;  %s1398_s10 = sshll.u32 (!%p329_p12), %s1649_s8, 6 }
  0x25   : > { %v1401_v14 = vpack.c.bf16 (!%p329_p12), %v385_v13, %v383_v11  ;;  %v1370_v22 = vld [vmem:[%s1960_s3 + $0x18] sm:$0xff] (!%p329_p12)  ;;  %v492_v24 = vld [vmem:[%s1962_s5 + $0x8] sm:$0xff] (!%p329_p12)  ;;  %v493_v25 = vld [vmem:[%s1962_s5 + $0x10] sm:$0xff] (!%p329_p12)  ;;  %s1910_s22 = scalar_lea.hbm (!%p329_p12), %s1966_s9, %s1398_s10  ;;  %s1574_s24 = smov (!%p329_p12), [#allocation4]  }
  0x26   : > { %1400 = vmatprep.subr.bf16.mxu0 (!%p329_p12), %v1399_v12  ;;  %497 = vperm.xlu0 (!%p329_p12), %1473, %v491_v8   ;;  %v626_v26 = vld [vmem:[%s1964_s7] sm:$0xff] (!%p329_p12)  ;;  %v627_v27 = vld [vmem:[%s1964_s7 + $0x8] sm:$0xff] (!%p329_p12)  ;;  %v1379_v29 = vld [vmem:[%s1962_s5 + $0x30] sm:$0xff] (!%p329_p12)  ;;  %s1511_s25 = sshll.u32 (!%p329_p12), %s1574_s24, 4  ;;  %s1512_s25 = int_to_ptr.vmem [resolvable:$false] %s1511_s25 }
  0x27   : > { %1402 = vmatpush1.bf16.msra.mxu0 (!%p329_p12), %v1401_v14  ;;  %502 = vperm.xlu1 (!%p329_p12), %1474, %v492_v24   ;;  %v1377_v28 = vld [vmem:[%s1962_s5 + $0x20] sm:$0xff] (!%p329_p12)  ;;  %v1387_v30 = vld [vmem:[%s1964_s7 + $0x10] sm:$0xff] (!%p329_p12)  ;;  %v1388_v31 = vld [vmem:[%s1964_s7 + $0x18] sm:$0xff] (!%p329_p12)  ;;  %s1513_s26 = scalar_lea.vmem (!%p329_p12), %s1512_s25, 128 }
  0x28   : > { %s1978_s15 = smov (!%p377_p13, %s1357_s15), 3  ;;  %v487_v43 = vld [vmem:[%s1961_s4] sm:$0xff]  ;;  %v488_v44 = vld [vmem:[%s1961_s4 + $0x8] sm:$0xff]  ;;  %v489_v45 = vld [vmem:[%s1961_s4 + $0x10] sm:$0xff] }
  0x29   : > { %s1358_s17 = sshll.u32 %s1978_s15, 3  ;;  %v490_v46 = vld [vmem:[%s1961_s4 + $0x18] sm:$0xff]  ;;  %s1271_s15 = sshll.u32 %s1888_s30, 4  ;;  %s1912_s15 = int_to_ptr.vmem [resolvable:$true] %s1271_s15 }
  0x2a   : > { %1359 = vmatmul.mubr.msk.f32.vlgmr.msra.gmra.mrb[0].mxu0 %vm403_vm0, %v389_v15  ;;  %512 = vperm.xlu0 %1473, %v494_v16   ;;  %s380_s23 = scalar_lea.vmem %s1958_s1, %s1358_s17  ;;  %v624_v16 = vld [vmem:[%s1963_s6] sm:$0xff]  ;;  %s1507_s8 = scalar_lea.vmem %s1912_s15, 64 }
  0x2b   : > { %480 = vmatprep.mubr.f32.mxu0 %v1571_v5  ;;  %507 = vperm.xlu1 %1474, %v493_v25   ;;  %v1755_v36 = vld [vmem:[%s380_s23 + $0x8] sm:$0xff]  ;;  %v1759_v38 = vld [vmem:[%s380_s23] sm:$0xff]  ;;  %s1257_s23 = scalar_lea.sflag [#allocation5], %s1686_s29  ;;  %p1508_p0 = scmp.ne.s32.totalorder %s1912_s15, %s1507_s8 }
  0x2c   : > { %p1514_p3 = scmp.lt.s32.totalorder %s1912_s15, %s1512_s25  ;;  %p1515_p4 = scmp.lt.s32.totalorder %s1513_s26, %s1507_s8 }
  0x2d   : > { %p1509_p1 = pnand %p1508_p0, %p1667_p6 }
  0x2e   : > { %1360 = vmatmul.mubr.msk.f32.gmra.mrb[2].mxu0 %vm403_vm0, %v390_v17  ;;  %400 = vperm.xlu0 %1473, %v392_v18   ;;  %v625_v17 = vld [vmem:[%s1963_s6 + $0x8] sm:$0xff]  ;;  %p1516_p5 = por %p1515_p4, %p1514_p3 }
  0x2f   : > { %709 = vmatprep.mubr.f32.mxu0 %v1571_v5  ;;  %630 = vperm.xlu1 %1474, %v626_v26   ;;  %p1510_p2 = pneg %p1509_p1 }
  0x31   : > { %p1517_p7 = pnand %p1516_p5, %p1510_p2 }
  0x32   : > { %760 = vperm.xlu0 %1473, %v1369_v19  }
  0x33   : > { %635 = vperm.xlu1 %1474, %v627_v27  }
  0x36   : > { %868 = vperm.xlu0 %1473, %v1378_v20  }
  0x37   : > { %863 = vperm.xlu1 %1474, %v1377_v28  }
  0x3a   : > { %878 = vperm.xlu0 %1473, %v1380_v21  }
  0x3b   : > { %873 = vperm.xlu1 %1474, %v1379_v29  }
  0x3e   : > { %765 = vperm.xlu0 %1473, %v1370_v22  }
  0x3f   : > { %998 = vperm.xlu1 %1474, %v1387_v30  }
  0x42   : > { %1122 = vperm.xlu0 %1473, %v1119_v23  }
  0x43   : > { %1003 = vperm.xlu1 %1474, %v1388_v31  }
  0xa1   : > { %v396_v32 = vpop.permute.xlu0 %395 }
  0xa5   : > { %v498_v49 = vpop.permute.xlu0 %497 }
  0xa6   : > { %v503_v51 = vpop.permute.xlu1 %502 }
  0xa9   : > { %v513_v3 = vpop.permute.xlu0 %512 }
  0xaa   : > { %v508_v0 = vpop.permute.xlu1 %507 }
  0xae   : > { %v631_v18 = vpop.permute.xlu1 %630 }
  0xfd   : > { %v476_v33 = vpop.f32.mrb[0].mxu0 }
  0xfe   : > { %v1753_v34 = vadd.f32 %v476_v33, %v396_v32  ;;  %v478_v35 = vpop.f32.mrb[1].mxu0  ;;  %v636_v33 = vpop.permute.xlu1 %635 }
  0xff   : > { %v1757_v37 = vadd.f32 %v478_v35, %v396_v32 }
 0x100   : > { %v1405_v42 = vpack.c.bf16 %v1759_v38, %v1753_v34 }
 0x101   : > { %v1761_v39 = vpop.f32.mrb[2].mxu0  ;;  %v1403_v40 = vpack.c.bf16 %v1755_v36, %v1757_v37 }
 0x102   : > { %v1765_v41 = vpop.f32.mrb[3].mxu0 }
 0x103   : > { %1404 = vmatprep.subr.bf16.mxu1 %v1403_v40  ;;  %v401_v40 = vpop.permute.xlu0 %400 }
 0x104   : > { %1406 = vmatpush1.bf16.msra.mxu1 %v1405_v42 }
 0x107   : > { %1361 = vmatmul.mubr.msk.f32.vlgmr.msra.gmra.mrb[0].mxu1 %vm403_vm0, %v487_v43  ;;  %v483_v43 = vadd.f32 %v1761_v39, %v401_v40  ;;  %v1367_v39 = vld [vmem:[%s1959_s2 + $0x10] sm:$0xff] }
 0x108   : > { %597 = vmatprep.mubr.f32.mxu1 %v1571_v5 }
 0x10b   : > { %1362 = vmatmul.mubr.msk.f32.gmra.mrb[2].mxu1 %vm403_vm0, %v488_v44 }
 0x10c   : > { %603 = vmatprep.mubr.f32.mxu1 %v1571_v5 }
 0x10f   : > { %1363 = vmatmul.mubr.msk.f32.gmra.mrb[4].mxu1 %vm403_vm0, %v489_v45  ;;  %v485_v45 = vadd.f32 %v1765_v41, %v401_v40  ;;  %v1368_v41 = vld [vmem:[%s1959_s2 + $0x18] sm:$0xff]  ;;  %v1385_v40 = vld [vmem:[%s1963_s6 + $0x10] sm:$0xff] }
 0x110   : > { %609 = vmatprep.mubr.f32.mxu1 %v1571_v5 }
 0x113   : > { %1364 = vmatmul.mubr.msk.f32.gmra.mrb[6].mxu1 %vm403_vm0, %v490_v46 }
 0x114   : > { %957 = vmatprep.mubr.f32.mxu1 %v1571_v5 }
 0x1da   : > { %v593_v47 = vpop.f32.mrb[0].mxu1 }
 0x1db   : > { %v595_v48 = vpop.f32.mrb[1].mxu1  ;;  %v594_v50 = vadd.f32 %v593_v47, %v498_v49 }
 0x1dc   : > { %v596_v52 = vadd.f32 %v595_v48, %v498_v49 }
 0x1dd   : > { %v616_v57 = vmax.f32 %v594_v50, 0.0 }
 0x1de   : > { %v599_v53 = vpop.f32.mrb[2].mxu1  ;;  %v617_v59 = vmax.f32 %v596_v52, 0.0 }
 0x1df   : > { %v600_v54 = vadd.f32 %v599_v53, %v503_v51  ;;  %v601_v55 = vpop.f32.mrb[3].mxu1 }
 0x1e0   : > { %v602_v56 = vadd.f32 %v601_v55, %v503_v51 }
 0x1e1   : > { %v618_v58 = vmax.f32 %v600_v54, 0.0 }
 0x1e2   : > { %v619_v60 = vmax.f32 %v602_v56, 0.0  ;;  %v605_v61 = vpop.f32.mrb[4].mxu1 }
 0x1e3   : > { %v1409_v62 = vpack.c.bf16 %v618_v58, %v616_v57  ;;  %v607_v63 = vpop.f32.mrb[5].mxu1  ;;  %v606_v2 = vadd.f32 %v605_v61, %v508_v0 }
 0x1e4   : > { %v1407_v1 = vpack.c.bf16 %v619_v60, %v617_v59  ;;  %v608_v4 = vadd.f32 %v607_v63, %v508_v0  ;;  %v1376_v63 = vld [vmem:[%s1961_s4 + $0x38] sm:$0xff] }
 0x1e5   : > { %v620_v10 = vmax.f32 %v606_v2, 0.0  ;;  %v864_v2 = vpop.permute.xlu1 %863 }
 0x1e6   : > { %v611_v6 = vpop.f32.mrb[6].mxu1  ;;  %1408 = vmatprep.subr.bf16.mxu0 %v1407_v1  ;;  %v621_v12 = vmax.f32 %v608_v4, 0.0 }
 0x1e7   : > { %v612_v7 = vadd.f32 %v611_v6, %v513_v3  ;;  %v613_v8 = vpop.f32.mrb[7].mxu1  ;;  %1410 = vmatpush1.bf16.msra.mxu0 %v1409_v62  ;;  %v1373_v62 = vld [vmem:[%s1961_s4 + $0x20] sm:$0xff] }
 0x1e8   : > { %v614_v9 = vadd.f32 %v613_v8, %v513_v3 }
 0x1e9   : > { %v622_v11 = vmax.f32 %v612_v7, 0.0 }
 0x1ea   : > { %v623_v13 = vmax.f32 %v614_v9, 0.0 }
 0x1eb   : > { %v1413_v14 = vpack.c.bf16 %v622_v11, %v620_v10 }
 0x1ec   : > { %v1411_v15 = vpack.c.bf16 %v623_v13, %v621_v12 }
 0x1ee   : > { %1412 = vmatprep.subr.bf16.mxu0 %v1411_v15 }
 0x1ef   : > { %1414 = vmatpush1.bf16.msra.mxu0 %v1413_v14 }
 0x1f2   : > { %1365 = vmatmul.mubr.msk.f32.vlgmr.msra.gmra.mrb[4].mxu0 %vm638_vm1, %v624_v16 }
 0x1f3   : > { %715 = vmatprep.mubr.f32.mxu0 %v1571_v5 }
 0x1f6   : > { %1366 = vmatmul.mubr.msk.f32.gmra.mrb[6].mxu0 %vm638_vm1, %v625_v17 }
 0x1f7   : > { %838 = vmatprep.mubr.f32.mxu0 %v1571_v5 }
 0x2c5   : > { %v711_v19 = vpop.f32.mrb[4].mxu0 }
 0x2c6   : > { %v712_v20 = vadd.f32 %v711_v19, %v631_v18  ;;  %v713_v21 = vpop.f32.mrb[5].mxu0 }
 0x2c7   : > { %v714_v22 = vadd.f32 %v713_v21, %v631_v18  ;;  %v874_v18 = vpop.permute.xlu1 %873 }
 0x2c8   : > { %v722_v23 = vmul.f32 0.1, %v712_v20 }
 0x2c9   : > { %v723_v24 = vmul.f32 0.1, %v714_v22  ;;  %v717_v25 = vpop.f32.mrb[6].mxu0 }
 0x2ca   : > { %1475 = vtanh.f32 %v722_v23  ;;  %v719_v26 = vpop.f32.mrb[7].mxu0  ;;  %v718_v35 = vadd.f32 %v717_v25, %v636_v33 }
 0x2cb   : > { %1477 = vtanh.f32 %v723_v24  ;;  %v720_v42 = vadd.f32 %v719_v26, %v636_v33 }
 0x2cc   : > { %v724_v47 = vmul.f32 0.1, %v718_v35 }
 0x2cd   : > { %v725_v49 = vmul.f32 0.1, %v720_v42  ;;  %v1386_v42 = vld [vmem:[%s1963_s6 + $0x18] sm:$0xff] }
 0x2d4   : > { %v1476_v27 = vpop.eup %1475 }
 0x2d5   : > { %v1478_v28 = vpop.eup %1477  ;;  %v1799_v29 = vmul.f32 1.9, %v1476_v27 }
 0x2d6   : > { %v1801_v30 = vmul.f32 1.9, %v1478_v28 }
 0x2d7   : > { %v730_v31 = vmul.f32 1.442695, %v1799_v29 }
 0x2d8   : > { %v732_v32 = vmul.f32 1.442695, %v1801_v30 }
 0x2d9   : > { %1479 = vpow2.f32 %v730_v31 }
 0x2da   : > { %1481 = vpow2.f32 %v732_v32 }
 0x2e3   : > { %v1480_v44 = vpop.eup %1479 }
 0x2e4   : > { %v1482_v46 = vpop.eup %1481  ;;  %v734_v48 = vmul.f32 %v1480_v44, %v483_v43  ;;  %v999_v43 = vpop.permute.xlu1 %998 }
 0x2e5   : > { %v735_v50 = vmul.f32 %v1482_v46, %v485_v45 }
 0x2e6   : > { %v736_v51 = vadd.f32 %v734_v48, %v724_v47 }
 0x2e7   : > { %v737_v52 = vadd.f32 %v735_v50, %v725_v49 }
 0x2e8   : > { %v1417_v54 = vpack.c.bf16 %v736_v51, %v1753_v34 }
 0x2e9   : > { %v1415_v53 = vpack.c.bf16 %v737_v52, %v1757_v37  ;;  %v761_v37 = vpop.permute.xlu0 %760  ;;  %v738_v52 = vrot.slane %v1799_v29, 4 }
 0x2eb   : > { %1416 = vmatprep.subr.bf16.mxu0 %v1415_v53  ;;  %v739_v53 = vadd.f32 %v738_v52, %v1799_v29 }
 0x2ec   : > { %1418 = vmatpush1.bf16.msra.mxu0 %v1417_v54 }
 0x2ed   : > { %v869_v4 = vpop.permute.xlu0 %868 }
 0x2ef   : > { %1371 = vmatmul.mubr.msk.f32.vlgmr.msra.gmra.mrb[8].mxu0 %vm403_vm0, %v1367_v39 }
 0x2f0   : > { %844 = vmatprep.mubr.f32.mxu0 %v1571_v5 }
 0x2f1   : > { %v879_v21 = vpop.permute.xlu0 %878 }
 0x2f3   : > { %1372 = vmatmul.mubr.msk.f32.gmra.mrb[10].mxu0 %vm403_vm0, %v1368_v41 }
 0x2f4   : > { %1076 = vmatprep.mubr.f32.mxu0 %v1571_v5 }
 0x3c2   : > { %v840_v34 = vpop.f32.mrb[8].mxu0 }
 0x3c3   : > { %v1819_v55 = vadd.f32 %v840_v34, %v761_v37  ;;  %v842_v56 = vpop.f32.mrb[9].mxu0 }
 0x3c4   : > { %v1821_v57 = vadd.f32 %v842_v56, %v761_v37  ;;  %v740_v37 = vrot.slane %v739_v53, 2 }
 0x3c5   : > { %v1421_v60 = vpack.c.bf16 %v1759_v38, %v1819_v55  ;;  %v1375_v38 = vld [vmem:[%s1961_s4 + $0x30] sm:$0xff] }
 0x3c6   : > { %v1419_v58 = vpack.c.bf16 %v1755_v36, %v1821_v57  ;;  %v1825_v59 = vpop.f32.mrb[10].mxu0  ;;  %v1374_v36 = vld [vmem:[%s1961_s4 + $0x28] sm:$0xff] }
 0x3c7   : > { %v1829_v61 = vpop.f32.mrb[11].mxu0 }
 0x3c8   : > { %1420 = vmatprep.subr.bf16.mxu1 %v1419_v58 }
 0x3c9   : > { %1422 = vmatpush1.bf16.msra.mxu1 %v1421_v60 }
 0x3cc   : > { %1381 = vmatmul.mubr.msk.f32.vlgmr.msra.gmra.mrb[8].mxu1 %vm403_vm0, %v1373_v62 }
 0x3cd   : > { %963 = vmatprep.mubr.f32.mxu1 %v1571_v5 }
 0x3d0   : > { %1382 = vmatmul.mubr.msk.f32.gmra.mrb[10].mxu1 %vm403_vm0, %v1374_v36 }
 0x3d1   : > { %969 = vmatprep.mubr.f32.mxu1 %v1571_v5 }
 0x3d4   : > { %1383 = vmatmul.mubr.msk.f32.gmra.mrb[12].mxu1 %vm403_vm0, %v1375_v38 }
 0x3d5   : > { %975 = vmatprep.mubr.f32.mxu1 %v1571_v5 }
 0x3d8   : > { %1384 = vmatmul.mubr.msk.f32.gmra.mrb[14].mxu1 %vm403_vm0, %v1376_v63  ;;  %v741_v63 = vadd.f32 %v740_v37, %v739_v53 }
 0x49f   : > { %v959_v0 = vpop.f32.mrb[8].mxu1 }
 0x4a0   : > { %v961_v1 = vpop.f32.mrb[9].mxu1  ;;  %v960_v3 = vadd.f32 %v959_v0, %v864_v2 }
 0x4a1   : > { %v962_v6 = vadd.f32 %v961_v1, %v864_v2 }
 0x4a2   : > { %v982_v11 = vmax.f32 %v960_v3, 0.0 }
 0x4a3   : > { %v965_v7 = vpop.f32.mrb[10].mxu1  ;;  %v983_v13 = vmax.f32 %v962_v6, 0.0 }
 0x4a4   : > { %v966_v8 = vadd.f32 %v965_v7, %v869_v4  ;;  %v967_v9 = vpop.f32.mrb[11].mxu1 }
 0x4a5   : > { %v968_v10 = vadd.f32 %v967_v9, %v869_v4  ;;  %v742_v4 = vrot.slane %v741_v63, 1 }
 0x4a6   : > { %v984_v12 = vmax.f32 %v966_v8, 0.0  ;;  %v1004_v8 = vpop.permute.xlu1 %1003 }
 0x4a7   : > { %v985_v14 = vmax.f32 %v968_v10, 0.0  ;;  %v971_v15 = vpop.f32.mrb[12].mxu1 }
 0x4a8   : > { %v1425_v16 = vpack.c.bf16 %v984_v12, %v982_v11  ;;  %v973_v17 = vpop.f32.mrb[13].mxu1  ;;  %v972_v20 = vadd.f32 %v971_v15, %v874_v18  ;;  %v766_v12 = vpop.permute.xlu0 %765 }
 0x4a9   : > { %v1423_v19 = vpack.c.bf16 %v985_v14, %v983_v13  ;;  %v974_v22 = vadd.f32 %v973_v17, %v874_v18  ;;  %v743_v13 = vadd.f32 %v742_v4, %v741_v63  ;;  %v847_v17 = vadd.f32 %v1825_v59, %v766_v12 }
 0x4aa   : > { %v986_v27 = vmax.f32 %v972_v20, 0.0  ;;  %v849_v20 = vadd.f32 %v1829_v61, %v766_v12  ;;  %v1132_v59 = vmul.f32 %v1821_v57, %v1821_v57  ;;  %v1125_v61 = vlaneseq }
 0x4ab   : > { %v977_v23 = vpop.f32.mrb[14].mxu1  ;;  %1424 = vmatprep.subr.bf16.mxu0 %v1423_v19  ;;  %v987_v31 = vmax.f32 %v974_v22, 0.0 }
 0x4ac   : > { %v978_v24 = vadd.f32 %v977_v23, %v879_v21  ;;  %v979_v25 = vpop.f32.mrb[15].mxu1  ;;  %1426 = vmatpush1.bf16.msra.mxu0 %v1425_v16  ;;  %vm1883_vm2 = vcmp.lt.s32.totalorder %v1125_v61, 256 }
 0x4ad   : > { %v980_v26 = vadd.f32 %v979_v25, %v879_v21 }
 0x4ae   : > { %v988_v28 = vmax.f32 %v978_v24, 0.0 }
 0x4af   : > { %v989_v32 = vmax.f32 %v980_v26, 0.0 }
 0x4b0   : > { %v1429_v33 = vpack.c.bf16 %v988_v28, %v986_v27 }
 0x4b1   : > { %v1427_v35 = vpack.c.bf16 %v989_v32, %v987_v31  ;;  %v1131_v32 = vmul.f32 %v1819_v55, %v1819_v55  ;;  %v1123_v55 = vpop.permute.xlu0 %1122 }
 0x4b3   : > { %1428 = vmatprep.subr.bf16.mxu0 %v1427_v35 }
 0x4b4   : > { %1430 = vmatpush1.bf16.msra.mxu0 %v1429_v33 }
 0x4b7   : > { %1389 = vmatmul.mubr.msk.f32.vlgmr.msra.gmra.mrb[12].mxu0 %vm638_vm1, %v1385_v40 }
 0x4b8   : > { %1082 = vmatprep.mubr.f32.mxu0 %v1571_v5  ;;  %v744_v5 = vrot.slane %v1801_v30, 4 }
 0x4ba   : > { %v745_v54 = vadd.f32 %v744_v5, %v1801_v30 }
 0x4bb   : > { %1390 = vmatmul.mubr.msk.f32.gmra.mrb[14].mxu0 %vm638_vm1, %v1386_v42 }
 0x4bc   : > { %v746_v56 = vrot.slane %v745_v54, 2 }
 0x4be   : > { %v747_v1 = vadd.f32 %v746_v56, %v745_v54 }
 0x4c0   : > { %v748_v6 = vrot.slane %v747_v1, 1 }
 0x4c2   : > { %v749_v16 = vadd.f32 %v748_v6, %v747_v1 }
 0x58a   : > { %v1078_v44 = vpop.f32.mrb[12].mxu0 }
 0x58b   : > { %v1079_v45 = vadd.f32 %v1078_v44, %v999_v43  ;;  %v1080_v46 = vpop.f32.mrb[13].mxu0 }
 0x58c   : > { %v1081_v47 = vadd.f32 %v1080_v46, %v999_v43 }
 0x58d   : > { %v1089_v48 = vmul.f32 0.1, %v1079_v45 }
 0x58e   : > { %v1090_v49 = vmul.f32 0.1, %v1081_v47  ;;  %v1084_v50 = vpop.f32.mrb[14].mxu0  ;;  %v1126_v47 = vshrl.u32 %v1125_v61, 7 }
 0x58f   : > { %1483 = vtanh.f32 %v1089_v48  ;;  %v1086_v51 = vpop.f32.mrb[15].mxu0  ;;  %v1085_v11 = vadd.f32 %v1084_v50, %v1004_v8 }
 0x590   : > { %1485 = vtanh.f32 %v1090_v49  ;;  %v1087_v15 = vadd.f32 %v1086_v51, %v1004_v8  ;;  %v1127_v52 = vsub.s32 0, %v1126_v47 }
 0x591   : > { %v1091_v24 = vmul.f32 0.1, %v1085_v11 }
 0x592   : > { %v1092_v26 = vmul.f32 0.1, %v1087_v15  ;;  %v1128_v37 = vrot.slane %v1123_v55, %v1127_v52 }
 0x599   : > { %v1484_v39 = vpop.eup %1483 }
 0x59a   : > { %v1486_v41 = vpop.eup %1485  ;;  %v1095_v34 = vmul.f32 1.9, %v1484_v39  ;;  %v1573_v39 = vmov 1966171168  }
 0x59b   : > { %v1096_v58 = vmul.f32 1.9, %v1486_v41  ;;  %v1215_v57 = vunpack.c.l.s4 %v1573_v39 }
 0x59c   : > { %v1097_v60 = vmul.f32 1.442695, %v1095_v34  ;;  %v1105_v62 = vrot.slane %v1095_v34, 4 }
 0x59d   : > { %v1099_v36 = vmul.f32 1.442695, %v1096_v58  ;;  %v1111_v38 = vrot.slane %v1096_v58, 4 }
 0x59e   : > { %1487 = vpow2.f32 %v1097_v60  ;;  %v1106_v0 = vadd.f32 %v1105_v62, %v1095_v34  ;;  %v1216_v62 = vunpack.c.0.s8 %v1215_v57 }
 0x59f   : > { %1489 = vpow2.f32 %v1099_v36  ;;  %v1112_v2 = vadd.f32 %v1111_v38, %v1096_v58 }
 0x5a0   : > { %v1107_v3 = vrot.slane %v1106_v0, 2 }
 0x5a1   : > { %v1113_v29 = vrot.slane %v1112_v2, 2 }
 0x5a2   : > { %v1108_v30 = vadd.f32 %v1107_v3, %v1106_v0 }
 0x5a3   : > { %v1114_v7 = vadd.f32 %v1113_v29, %v1112_v2  ;;  %v1871_v2 = vsub.s32 %v1216_v62, %v1126_v47 }
 0x5a4   : > { %v1109_v9 = vrot.slane %v1108_v30, 1 }
 0x5a5   : > { %v1115_v10 = vrot.slane %v1114_v7, 1 }
 0x5a6   : > { %v1110_v14 = vadd.f32 %v1109_v9, %v1108_v30 }
 0x5a7   : > { %v1116_v18 = vadd.f32 %v1115_v10, %v1114_v7 }
 0x5a8   : > { %v1488_v19 = vpop.eup %1487  ;;  %v1117_v21 = vadd.f32 %v1110_v14, %v743_v13 }
 0x5a9   : > { %v1490_v22 = vpop.eup %1489  ;;  %v1118_v23 = vadd.f32 %v1116_v18, %v749_v16  ;;  %v1101_v25 = vmul.f32 %v1488_v19, %v847_v17 }
 0x5aa   : > { %v1102_v27 = vmul.f32 %v1490_v22, %v849_v20  ;;  %v1129_v58 = vadd.f32 %v1128_v37, %v1117_v21 }
 0x5ab   : > { %v1103_v28 = vadd.f32 %v1101_v25, %v1091_v24  ;;  %v1130_v36 = vadd.f32 %v1128_v37, %v1118_v23 }
 0x5ac   : > { %v1104_v31 = vadd.f32 %v1102_v27, %v1092_v26 }
 0x5ad   : > { %v1133_v33 = vmul.f32 %v1103_v28, %v1103_v28 }
 0x5ae   : > { %v1134_v35 = vmul.f32 %v1104_v31, %v1104_v31 }
 0x5af   : > { %v1135_v40 = vadd.f32 %v1133_v33, %v1131_v32 }
 0x5b0   : > { %v1142_v42 = vadd.f32 %v1134_v35, %v1132_v59 }
 0x5b1   : > { %v1136_v43 = vrot.slane %v1135_v40, 4 }
 0x5b2   : > { %v1143_v44 = vrot.slane %v1142_v42, 4 }
 0x5b3   : > { %v1137_v45 = vadd.f32 %v1136_v43, %v1135_v40 }
 0x5b4   : > { %v1144_v46 = vadd.f32 %v1143_v44, %v1142_v42 }
 0x5b5   : > { %v1138_v48 = vrot.slane %v1137_v45, 2 }
 0x5b6   : > { %v1145_v49 = vrot.slane %v1144_v46, 2 }
 0x5b7   : > { %v1139_v50 = vadd.f32 %v1138_v48, %v1137_v45 }
 0x5b8   : > { %v1146_v51 = vadd.f32 %v1145_v49, %v1144_v46 }
 0x5b9   : > { %v1140_v5 = vrot.slane %v1139_v50, 1 }
 0x5ba   : > { %v1147_v53 = vrot.slane %v1146_v51, 1 }
 0x5bb   : > { %v1141_v54 = vadd.f32 %v1140_v5, %v1139_v50 }
 0x5bc   : > { %v1148_v41 = vadd.f32 %v1147_v53, %v1146_v51 }
 0x5bd   : > { %v1149_v34 = vmul.f32 0.5, %v1141_v54 }
 0x5be   : > { %v1150_v56 = vmul.f32 0.5, %v1148_v41 }
 0x5bf   : > { %v1151_v60 = vsub.f32 -14.703016, %v1149_v34 }
 0x5c0   : > { %v1152_v38 = vsub.f32 -14.703016, %v1150_v56 }
 0x5c1   : > { %v1153_v63 = vadd.f32 %v1151_v60, %v1129_v58 }
 0x5c2   : > { %v1154_v0 = vadd.f32 %v1152_v38, %v1130_v36 }
 0x5c3   : > { %v1869_v1 = vmul.f32 0.0625, %v1153_v63 }
 0x5c4   : > { %v1873_v3 = vmul.f32 0.0625, %v1154_v0 }
 0x5c5   : > { %v1159_v29 = vsub.f32 0.0, %v1869_v1  ;;  %v1185_v4 = vmul.f32 1.442695, %v1869_v1  ;;  %vm1157_vm7 = vcmp.ge.f32.partialorder %v1869_v1, 0.0 }
 0x5c6   : > { %v1160_v30 = vsub.f32 0.0, %v1873_v3  ;;  %v1187_v6 = vmul.f32 1.442695, %v1873_v3  ;;  %v1213_v7 = vcombine.low %v1869_v1, %v1873_v3  ;;  %vm1158_vm8 = vcmp.ge.f32.partialorder %v1873_v3, 0.0 }
 0x5c7   : > { %v1161_v8 = vmul.f32 1.442695, %v1159_v29  ;;  %1491 = vpow2.f32 %v1185_v4 }
 0x5c8   : > { %v1163_v9 = vmul.f32 1.442695, %v1160_v30  ;;  %1493 = vpow2.f32 %v1187_v6  ;;  %v1220_v10 = vrot.slane %v1213_v7, %v1871_v2 }
 0x5c9   : > { %1495 = vpow2.f32 %v1161_v8 }
 0x5ca   : > { %1497 = vpow2.f32 %v1163_v9  ;;  %v1227_v12 = vrot.slane %v1220_v10, %v1871_v2 }
 0x5cc   : > { %1233 = vst.msk [vmem:[%s1888_s30] ss:$2 sm:$0x3] %vm1883_vm2, %v1227_v12 }
 0x5d1   : > { %v1492_v13 = vpop.eup %1491 }
 0x5d2   : > { %v1494_v14 = vpop.eup %1493  ;;  %v1189_v15 = vadd.f32 1.0, %v1492_v13  ;;  %v1192_v21 = vmul.f32 -0.5, %v1492_v13  ;;  %v1195_v26 = vand.u32 2147483647, %v1492_v13 }
 0x5d3   : > { %v1496_v16 = vpop.eup %1495  ;;  %v1198_v19 = vadd.f32 1.0, %v1494_v14  ;;  %v1201_v25 = vmul.f32 -0.5, %v1494_v14  ;;  %v1204_v43 = vand.u32 2147483647, %v1494_v14 }
 0x5d4   : > { %v1498_v17 = vpop.eup %1497  ;;  %v1165_v18 = vadd.f32 1.0, %v1496_v16  ;;  %1499 = vlog2.f32 %v1189_v15  ;;  %v1168_v22 = vmul.f32 -0.5, %v1496_v16  ;;  %v1193_v24 = vadd.f32 1.0, %v1192_v21 }
 0x5d5   : > { %v1174_v20 = vadd.f32 1.0, %v1498_v17  ;;  %v1177_v23 = vmul.f32 -0.5, %v1498_v17  ;;  %v1171_v31 = vand.u32 2147483647, %v1496_v16  ;;  %v1180_v33 = vand.u32 2147483647, %v1498_v17 }
 0x5d6   : > { %1501 = vlog2.f32 %v1165_v18  ;;  %v1169_v27 = vadd.f32 1.0, %v1168_v22  ;;  %v1194_v35 = vmul.f32 %v1492_v13, %v1193_v24  ;;  %v1202_v40 = vadd.f32 1.0, %v1201_v25 }
 0x5d7   : > { %1503 = vlog2.f32 %v1174_v20  ;;  %v1178_v32 = vadd.f32 1.0, %v1177_v23  ;;  %vm1893_vm3 = vcmp.lt.f32.partialorder %v1195_v26, 0.0004427343  ;;  %vm1172_vm4 = vcmp.lt.f32.partialorder %v1171_v31, 0.0004427343 }
 0x5d8   : > { %1505 = vlog2.f32 %v1198_v19  ;;  %v1170_v46 = vmul.f32 %v1496_v16, %v1169_v27  ;;  %vm1181_vm5 = vcmp.lt.f32.partialorder %v1180_v33, 0.0004427343  ;;  %v1203_v5 = vmul.f32 %v1494_v14, %v1202_v40 }
 0x5d9   : > { %v1179_v50 = vmul.f32 %v1498_v17, %v1178_v32  ;;  %vm1205_vm6 = vcmp.lt.f32.partialorder %v1204_v43, 0.0004427343 }
 0x5de   : > { %v1500_v28 = vpop.eup %1499 }
 0x5df   : > { %v1191_v59 = vmul.f32 0.6931472, %v1500_v28 }
 0x5e0   : > { %v1502_v42 = vpop.eup %1501 }
 0x5e1   : > { %v1504_v44 = vpop.eup %1503  ;;  %v1167_v45 = vmul.f32 0.6931472, %v1502_v42  ;;  %v1197_v47 = vsel %vm1893_vm3, %v1194_v35, %v1191_v59 }
 0x5e2   : > { %v1506_v48 = vpop.eup %1505  ;;  %v1176_v49 = vmul.f32 0.6931472, %v1504_v44  ;;  %v1207_v54 = vsub.f32 %v1869_v1, %v1197_v47 }
 0x5e3   : > { %v1173_v51 = vsel %vm1172_vm4, %v1170_v46, %v1167_v45  ;;  %v1200_v52 = vmul.f32 0.6931472, %v1506_v48 }
 0x5e4   : > { %v1182_v55 = vsel %vm1181_vm5, %v1179_v50, %v1176_v49  ;;  %v1183_v53 = vsub.f32 0.0, %v1173_v51 }
 0x5e5   : > { %v1184_v39 = vsub.f32 0.0, %v1182_v55  ;;  %v1206_v57 = vsel %vm1205_vm6, %v1203_v5, %v1200_v52 }
 0x5e6   : > { %v1208_v41 = vsub.f32 %v1873_v3, %v1206_v57  ;;  %v1209_v37 = vsel %vm1157_vm7, %v1183_v53, %v1207_v54 }
 0x5e7   : > { %v1234_v34 = vsub.f32 0.0, %v1209_v37 }
 0x5e8   : > { %v1210_v56 = vsel %vm1158_vm8, %v1184_v39, %v1208_v41 }
 0x5e9   : > { %v1235_v58 = vsub.f32 0.0, %v1210_v56 }
 0x5eb   : > { %v1238_v60 = vcombine.low %v1234_v34, %v1235_v58 }
 0x5ed   : > { %v1245_v62 = vrot.slane %v1238_v60, %v1871_v2 }
 0x5ef   : > { %v1252_v36 = vrot.slane %v1245_v62, %v1871_v2 }
 0x5f1   : > { %1391 = vst.msk [vmem:[%s1888_s30 + $0x1] ss:$2 sm:$0x3] %vm1883_vm2, %v1252_v36 }
 0x5f2   : > { %1520 = shalt.err (!%p1517_p7)
}
 0x5f3   : > { %s1521_s29 = scalar_lea.hbm %s1910_s22, 64  ;;  %s1525_s30 = scalar_lea.hbm %s1966_s9, 128 }
 0x5f4   : > { %p1522_p10 = scmp.ne.s32.totalorder %s1910_s22, %s1521_s29  ;;  %p1526_p13 = scmp.lt.u32.totalorder %s1910_s22, %s1966_s9 }
 0x5f5   : > { %p1527_p0 = scmp.lt.u32.totalorder %s1525_s30, %s1521_s29  ;;  %p1529_p2 = scmp.lt.u32.totalorder %s1521_s29, %s1910_s22 }
 0x5f6   : > { %p1523_p11 = pnand %p1522_p10, %p1667_p6 }
 0x5f7   : > { %p1528_p1 = por %p1527_p0, %p1526_p13 }
 0x5f8   : > { %p1524_p12 = pneg %p1523_p11 }
 0x5f9   : > { %p1530_p3 = por %p1529_p2, %p1528_p1 }
 0x5fb   : > { %p1531_p4 = pnand %p1530_p3, %p1524_p12 }
 0x5fd   : > { %1534 = shalt.err (!%p1531_p4)
}
 0x5fe   : > { %1431 = dma.vmem_to_hbm [thread:$0]  (%p1667_p6), %s1912_s15, 64, %s1910_s22, %s1257_s23  }
 0x5ff PF: > { %s1283_s18 = sand.u32 1, %s1557_s11   ;;  %p1434_p5 = pnand %p1350_p9, %p1671_p8 }
 0x600   : > { %s1284_s8 = scalar_lea.sflag [#allocation5], %s1283_s18 }
 0x601   : > { %1552 = dma.done.wait (!%p1434_p5), %s1284_s8, 64  }
 0x602   : > { %1554 = vsyncadd (!%p1434_p5), %s1284_s8, 4294967232  ;;  %p21_p7 = scmp.ge.s32.totalorder %s1653_s16, 4   ;;  %s1973_s11 = smov %s1561_s12 }
 0x603   : > { %s1974_s12 = smov %s1565_s13  ;;  %s1975_s13 = smov %s1665_s19 }
 0x604   : > { %s1976_s14 = smov %s1653_s16  ;;  %23 = sbr.rel (!%p21_p7) target bundleno = 6 (0x6), region = 129 }
 0x60b   :  { %1289 = vsyncpa [#allocation5], 1 }
 0x60c   :  { %1291 = vsyncpa [#allocation5 + $0x1], 1 }

</bundles_post_ra>
